<compile_context>
chip_gen: v5e
topology: v5e:2x2
jax: 0.10.0
libtpu: 0.0.40
codegen_flags: <defaults>
</compile_context>

<pallas_src>
import functools

import jax
import jax.numpy as jnp
from jax.experimental import pallas as pl
from jax.experimental.pallas import tpu as pltpu

_INV_SQRT2 = 0.7071067811865476  # 1/sqrt(2)
_LN_EPS = 1e-5


def _gelu_exact(x):
    # PyTorch nn.GELU() default: exact erf formulation.
    return 0.5 * x * (1.0 + jax.lax.erf(x * _INV_SQRT2))


def _round_up(x, m):
    return ((x + m - 1) // m) * m


def genre_conditioning_kernel(
    x_ref,    # (TB, num_genres)   f32
    w1_ref,   # (num_genres, HP)   f32, cols >= h_real are zero
    w2_ref,   # (HP, HP)           f32, rows/cols >= h_real are zero
    ln_ref,   # (8, HP) packed rows: 0=b1, 1=gamma, 2=beta, 3=b2, 4=lane mask
    o_ref,    # (TB, h_real)       narrow, unpadded output
    *,
    h_real,   # real hidden dim (static)
):
    x = x_ref[...]
    b1 = ln_ref[0:1, :]
    gamma = ln_ref[1:2, :]
    beta = ln_ref[2:3, :]
    b2 = ln_ref[3:4, :]
    mask = ln_ref[4:5, :]           # 1.0 on real lanes, 0.0 on padded lanes

    # Linear 1 + GELU.  Padded output lanes are exactly 0 (zero weight cols,
    # zero bias, gelu(0) == 0).
    h = jnp.dot(x, w1_ref[...], preferred_element_type=jnp.float32) + b1
    h = _gelu_exact(h)

    # LayerNorm over the real h_real features (biased variance, eps=1e-5).
    inv_n = 1.0 / h_real
    mean = jnp.sum(h, axis=-1, keepdims=True) * inv_n   # padded lanes are 0
    centered = h - mean
    cm = centered * mask                                 # mask only on var path
    var = jnp.sum(cm * cm, axis=-1, keepdims=True) * inv_n
    inv = jax.lax.rsqrt(var + _LN_EPS)
    hn = centered * inv * gamma + beta   # padded lanes: gamma=beta=0 -> 0

    # Linear 2 + GELU.  Padded rows of W2 are zero, so real output cols are
    # unaffected by padding.  Only the first h_real columns are stored.
    h2 = jnp.dot(hn, w2_ref[...], preferred_element_type=jnp.float32) + b2
    o_ref[...] = _gelu_exact(h2[:, :h_real]).astype(o_ref.dtype)


def pack_genre_conditioning_params(params):
    """One-time packing of PyTorch-layout params into lane-dense kernel layout.

    Call this once (at init / param load), NOT per forward call.
    """
    w1, b1, gamma, beta, w2, b2 = (
        params["w1"], params["b1"], params["gamma"],
        params["beta"], params["w2"], params["b2"],
    )
    h_dim, num_genres = w1.shape          # PyTorch Linear: weight = (out, in)
    h_pad = _round_up(h_dim, 128)
    f32 = jnp.float32

    w1_p = jnp.zeros((num_genres, h_pad), f32).at[:, :h_dim].set(w1.T.astype(f32))
    w2_p = jnp.zeros((h_pad, h_pad), f32).at[:h_dim, :h_dim].set(w2.T.astype(f32))
    ln_pack = (
        jnp.zeros((8, h_pad), f32)
        .at[0, :h_dim].set(b1.astype(f32))
        .at[1, :h_dim].set(gamma.astype(f32))
        .at[2, :h_dim].set(beta.astype(f32))
        .at[3, :h_dim].set(b2.astype(f32))
        .at[4, :h_dim].set(1.0)           # lane mask for the variance reduction
    )
    packed = {"w1_p": w1_p, "w2_p": w2_p, "ln_pack": ln_pack}
    return packed, h_dim


@functools.partial(jax.jit, static_argnames=("h_dim", "tile_b"))
def genre_conditioning_forward(genre, w1_p, w2_p, ln_pack, *, h_dim, tile_b=1024):
    """genre: (B, num_genres) float32.  Returns (B, h_dim) float32."""
    B, num_genres = genre.shape
    h_pad = w1_p.shape[1]
    f32 = jnp.float32

    # Pad the batch only to a sublane multiple of 8 (no tile over-padding).
    b_pad = _round_up(max(B, 8), 8)
    x = genre.astype(f32)
    if b_pad != B:
        x = jnp.pad(x, ((0, b_pad - B), (0, 0)))

    # Large batch tiles; ensure >= 2 grid steps when possible so the
    # "parallel" batch axis can shard across both v7x TensorCores.
    tile_eff = min(tile_b, b_pad)
    if b_pad >= 16:
        tile_eff = min(tile_eff, _round_up(b_pad // 2, 8))
    grid = (pl.cdiv(b_pad, tile_eff),)    # partial last block handled by Pallas

    kernel = functools.partial(genre_conditioning_kernel, h_real=h_dim)

    cost = pl.CostEstimate(
        flops=2 * b_pad * (num_genres * h_pad + h_pad * h_pad),
        transcendentals=b_pad * (h_pad + h_dim) + b_pad,
        bytes_accessed=4 * (b_pad * num_genres + num_genres * h_pad
                            + h_pad * h_pad + 8 * h_pad + b_pad * h_dim),
    )

    out_p = pl.pallas_call(
        kernel,
        out_shape=jax.ShapeDtypeStruct((b_pad, h_dim), f32),   # narrow output
        grid_spec=pltpu.PrefetchScalarGridSpec(
            num_scalar_prefetch=0,
            grid=grid,
            in_specs=[
                pl.BlockSpec((tile_eff, num_genres), lambda i: (i, 0)),  # x tile
                pl.BlockSpec((num_genres, h_pad), lambda i: (0, 0)),     # W1 (resident)
                pl.BlockSpec((h_pad, h_pad), lambda i: (0, 0)),          # W2 (resident)
                pl.BlockSpec((8, h_pad), lambda i: (0, 0)),              # b1/γ/β/b2/mask
            ],
            out_specs=pl.BlockSpec((tile_eff, h_dim), lambda i: (i, 0)),
        ),
        compiler_params=pltpu.CompilerParams(
            dimension_semantics=("parallel",),
        ),
        cost_estimate=cost,
    )(x, w1_p, w2_p, ln_pack)

    return out_p[:B] if b_pad != B else out_p


def _reference_forward(genre, params):
    """Pure-JAX reference mirroring the PyTorch module."""
    h = genre @ params["w1"].T + params["b1"]
    h = _gelu_exact(h)
    mean = jnp.mean(h, axis=-1, keepdims=True)
    var = jnp.mean((h - mean) ** 2, axis=-1, keepdims=True)
    h = (h - mean) / jnp.sqrt(var + _LN_EPS) * params["gamma"] + params["beta"]
    h = h @ params["w2"].T + params["b2"]
    return _gelu_exact(h)


def _init_params(key, num_genres=8, h_dim=32):
    k1, k2, k3, k4 = jax.random.split(key, 4)
    s1 = 1.0 / jnp.sqrt(num_genres)
    s2 = 1.0 / jnp.sqrt(h_dim)
    return {
        "w1": jax.random.uniform(k1, (h_dim, num_genres), jnp.float32, -s1, s1),
        "b1": jax.random.uniform(k2, (h_dim,), jnp.float32, -s1, s1),
        "gamma": jnp.ones((h_dim,), jnp.float32),
        "beta": jnp.zeros((h_dim,), jnp.float32),
        "w2": jax.random.uniform(k3, (h_dim, h_dim), jnp.float32, -s2, s2),
        "b2": jax.random.uniform(k4, (h_dim,), jnp.float32, -s2, s2),
    }


if __name__ == "__main__":
    num_genres, h_dim, batch = 8, 32, 16

    key = jax.random.PRNGKey(0)
    pkey, xkey = jax.random.split(key)
    params = _init_params(pkey, num_genres=num_genres, h_dim=h_dim)

    # Pack weights ONCE (outside the per-call forward path).
    packed, h_dim_packed = pack_genre_conditioning_params(params)

    # Soft genre-membership vector per example.
    genre = jax.random.uniform(xkey, (batch, num_genres), jnp.float32)

    out = genre_conditioning_forward(
        genre, packed["w1_p"], packed["w2_p"], packed["ln_pack"],
        h_dim=h_dim_packed)
    out = jax.block_until_ready(out)

    ref = _reference_forward(genre, params)
    assert out.shape == (batch, h_dim)
    assert jnp.allclose(out, ref, rtol=1e-4, atol=1e-4)

    # Non-multiple-of-8 batch: exercises the row-pad + row-slice path.
    genre_odd = jax.random.uniform(jax.random.PRNGKey(1), (batch + 3, num_genres),
                                   jnp.float32)
    out_odd = jax.block_until_ready(genre_conditioning_forward(
        genre_odd, packed["w1_p"], packed["w2_p"], packed["ln_pack"],
        h_dim=h_dim_packed))
    assert out_odd.shape == (batch + 3, h_dim)
    assert jnp.allclose(out_odd, _reference_forward(genre_odd, params),
                        rtol=1e-4, atol=1e-4)

    # Partial last block on the cdiv grid (b_pad=40, tile=16 -> blocks 16/16/8).
    genre_part = jax.random.uniform(jax.random.PRNGKey(2), (40, num_genres),
                                    jnp.float32)
    out_part = jax.block_until_ready(genre_conditioning_forward(
        genre_part, packed["w1_p"], packed["w2_p"], packed["ln_pack"],
        h_dim=h_dim_packed, tile_b=16))
    assert jnp.allclose(out_part, _reference_forward(genre_part, params),
                        rtol=1e-4, atol=1e-4)

    print("KERNEL_OK")
</pallas_src>

<mosaic_0001>
module attributes {stable_mosaic.version = 11 : i64} {
  func.func @genre_conditioning_kernel(%arg0: i32, %arg1: memref<8x8xf32, #tpu.memory_space<vmem>>, %arg2: memref<8x128xf32, #tpu.memory_space<vmem>>, %arg3: memref<128x128xf32, #tpu.memory_space<vmem>>, %arg4: memref<8x128xf32, #tpu.memory_space<vmem>>, %arg5: memref<8x32xf32, #tpu.memory_space<vmem>>) attributes {dimension_semantics = [#tpu.dimension_semantics<parallel>], iteration_bounds = array<i64: 2>, scalar_prefetch = 0 : i64, scratch_operands = 0 : i64, tpu.core_type = #tpu.core_type<tc>, window_params = [{transform_indices = @transform_0, window_bounds = array<i64: 8, 8>}, {pipeline_mode = #tpu.pipeline_mode<synchronous>, transform_indices = @transform_1, window_bounds = array<i64: 8, 128>}, {pipeline_mode = #tpu.pipeline_mode<synchronous>, transform_indices = @transform_2, window_bounds = array<i64: 128, 128>}, {pipeline_mode = #tpu.pipeline_mode<synchronous>, transform_indices = @transform_3, window_bounds = array<i64: 8, 128>}, {transform_indices = @transform_4, window_bounds = array<i64: 8, 32>}]} {
    %c0 = arith.constant 0 : index
    %c0_0 = arith.constant 0 : index
    %0 = vector.load %arg1[%c0, %c0_0] : memref<8x8xf32, #tpu.memory_space<vmem>>, vector<8x8xf32>
    %c0_1 = arith.constant 0 : index
    %c0_2 = arith.constant 0 : index
    %1 = vector.load %arg4[%c0_1, %c0_2] : memref<8x128xf32, #tpu.memory_space<vmem>>, vector<1x128xf32>
    %c1 = arith.constant 1 : index
    %c0_3 = arith.constant 0 : index
    %2 = vector.load %arg4[%c1, %c0_3] : memref<8x128xf32, #tpu.memory_space<vmem>>, vector<1x128xf32>
    %c2 = arith.constant 2 : index
    %c0_4 = arith.constant 0 : index
    %3 = vector.load %arg4[%c2, %c0_4] : memref<8x128xf32, #tpu.memory_space<vmem>>, vector<1x128xf32>
    %c3 = arith.constant 3 : index
    %c0_5 = arith.constant 0 : index
    %4 = vector.load %arg4[%c3, %c0_5] : memref<8x128xf32, #tpu.memory_space<vmem>>, vector<1x128xf32>
    %c4 = arith.constant 4 : index
    %c0_6 = arith.constant 0 : index
    %5 = vector.load %arg4[%c4, %c0_6] : memref<8x128xf32, #tpu.memory_space<vmem>>, vector<1x128xf32>
    %c0_7 = arith.constant 0 : index
    %c0_8 = arith.constant 0 : index
    %6 = vector.load %arg2[%c0_7, %c0_8] : memref<8x128xf32, #tpu.memory_space<vmem>>, vector<8x128xf32>
    %cst = arith.constant dense<0.000000e+00> : vector<8x128xf32>
    %7 = tpu.matmul %0, %6, %cst {dimension_numbers = #tpu.dot_dimension_numbers<[1], [0], [0], [1], [0, 0, 1, 1], [], []>} : vector<8x8xf32>, vector<8x128xf32>, vector<8x128xf32> -> vector<8x128xf32>
    %8 = vector.broadcast %1 : vector<1x128xf32> to vector<8x128xf32>
    %9 = arith.addf %7, %8 : vector<8x128xf32>
    %cst_9 = arith.constant 5.000000e-01 : f32
    %10 = vector.broadcast %cst_9 : f32 to vector<8x128xf32>
    %11 = arith.mulf %10, %9 : vector<8x128xf32>
    %cst_10 = arith.constant 0.707106769 : f32
    %12 = vector.broadcast %cst_10 : f32 to vector<8x128xf32>
    %13 = arith.mulf %9, %12 : vector<8x128xf32>
    %14 = math.erf %13 : vector<8x128xf32>
    %cst_11 = arith.constant 1.000000e+00 : f32
    %15 = vector.broadcast %cst_11 : f32 to vector<8x128xf32>
    %16 = arith.addf %15, %14 : vector<8x128xf32>
    %17 = arith.mulf %11, %16 : vector<8x128xf32>
    %cst_12 = arith.constant dense<0.000000e+00> : vector<8xf32>
    %18 = vector.multi_reduction <add>, %17, %cst_12 [1] : vector<8x128xf32> to vector<8xf32>
    %19 = vector.shape_cast %18 : vector<8xf32> to vector<8x1xf32>
    %cst_13 = arith.constant 3.125000e-02 : f32
    %20 = vector.broadcast %cst_13 : f32 to vector<8x1xf32>
    %21 = arith.mulf %19, %20 : vector<8x1xf32>
    %22 = vector.broadcast %21 : vector<8x1xf32> to vector<8x128xf32>
    %23 = arith.subf %17, %22 : vector<8x128xf32>
    %24 = vector.broadcast %5 : vector<1x128xf32> to vector<8x128xf32>
    %25 = arith.mulf %23, %24 : vector<8x128xf32>
    %26 = arith.mulf %25, %25 : vector<8x128xf32>
    %cst_14 = arith.constant dense<0.000000e+00> : vector<8xf32>
    %27 = vector.multi_reduction <add>, %26, %cst_14 [1] : vector<8x128xf32> to vector<8xf32>
    %28 = vector.shape_cast %27 : vector<8xf32> to vector<8x1xf32>
    %cst_15 = arith.constant 3.125000e-02 : f32
    %29 = vector.broadcast %cst_15 : f32 to vector<8x1xf32>
    %30 = arith.mulf %28, %29 : vector<8x1xf32>
    %cst_16 = arith.constant 9.99999974E-6 : f32
    %31 = vector.broadcast %cst_16 : f32 to vector<8x1xf32>
    %32 = arith.addf %30, %31 : vector<8x1xf32>
    %33 = math.rsqrt %32 : vector<8x1xf32>
    %34 = vector.broadcast %33 : vector<8x1xf32> to vector<8x128xf32>
    %35 = arith.mulf %23, %34 : vector<8x128xf32>
    %36 = vector.broadcast %2 : vector<1x128xf32> to vector<8x128xf32>
    %37 = arith.mulf %35, %36 : vector<8x128xf32>
    %38 = vector.broadcast %3 : vector<1x128xf32> to vector<8x128xf32>
    %39 = arith.addf %37, %38 : vector<8x128xf32>
    %c0_17 = arith.constant 0 : index
    %c0_18 = arith.constant 0 : index
    %40 = vector.load %arg3[%c0_17, %c0_18] : memref<128x128xf32, #tpu.memory_space<vmem>>, vector<128x128xf32>
    %cst_19 = arith.constant dense<0.000000e+00> : vector<8x128xf32>
    %41 = tpu.matmul %39, %40, %cst_19 {dimension_numbers = #tpu.dot_dimension_numbers<[1], [0], [0], [1], [0, 0, 1, 1], [], []>} : vector<8x128xf32>, vector<128x128xf32>, vector<8x128xf32> -> vector<8x128xf32>
    %42 = vector.broadcast %4 : vector<1x128xf32> to vector<8x128xf32>
    %43 = arith.addf %41, %42 : vector<8x128xf32>
    %44 = vector.extract_strided_slice %43 {offsets = [0, 0], sizes = [8, 32], strides = [1, 1]} : vector<8x128xf32> to vector<8x32xf32>
    %cst_20 = arith.constant 5.000000e-01 : f32
    %45 = vector.broadcast %cst_20 : f32 to vector<8x32xf32>
    %46 = arith.mulf %45, %44 : vector<8x32xf32>
    %cst_21 = arith.constant 0.707106769 : f32
    %47 = vector.broadcast %cst_21 : f32 to vector<8x32xf32>
    %48 = arith.mulf %44, %47 : vector<8x32xf32>
    %49 = math.erf %48 : vector<8x32xf32>
    %cst_22 = arith.constant 1.000000e+00 : f32
    %50 = vector.broadcast %cst_22 : f32 to vector<8x32xf32>
    %51 = arith.addf %50, %49 : vector<8x32xf32>
    %52 = arith.mulf %46, %51 : vector<8x32xf32>
    %c0_23 = arith.constant 0 : index
    %c0_24 = arith.constant 0 : index
    %53 = vector.load %arg5[%c0_23, %c0_24] : memref<8x32xf32, #tpu.memory_space<vmem>>, vector<8x32xf32>
    tpu.vector_store %arg5[%c0_23, %c0_24], %52 {strides = array<i32>} : memref<8x32xf32, #tpu.memory_space<vmem>>, vector<8x32xf32>,
    return
  }
  func.func @transform_0(%arg0: i32) -> (i32, i32) {
    %c0_i32 = arith.constant 0 : i32
    %c0_i32_0 = arith.constant 0 : i32
    return %arg0, %c0_i32 : i32, i32
  }
  func.func @transform_1(%arg0: i32) -> (i32, i32) {
    %c0_i32 = arith.constant 0 : i32
    %c0_i32_0 = arith.constant 0 : i32
    %c0_i32_1 = arith.constant 0 : i32
    return %c0_i32, %c0_i32_0 : i32, i32
  }
  func.func @transform_2(%arg0: i32) -> (i32, i32) {
    %c0_i32 = arith.constant 0 : i32
    %c0_i32_0 = arith.constant 0 : i32
    %c0_i32_1 = arith.constant 0 : i32
    return %c0_i32, %c0_i32_0 : i32, i32
  }
  func.func @transform_3(%arg0: i32) -> (i32, i32) {
    %c0_i32 = arith.constant 0 : i32
    %c0_i32_0 = arith.constant 0 : i32
    %c0_i32_1 = arith.constant 0 : i32
    return %c0_i32, %c0_i32_0 : i32, i32
  }
  func.func @transform_4(%arg0: i32) -> (i32, i32) {
    %c0_i32 = arith.constant 0 : i32
    %c0_i32_0 = arith.constant 0 : i32
    return %arg0, %c0_i32 : i32, i32
  }
}

</mosaic_0001>

<bundles_post_ra>
// kernel: genre_conditioning_forward.1
= control target key start
LH: loop header
LB: loop body
LE: loop exit
PB: predicated region body
PF: predicated region fallthrough
CT: control target
= control target key end

     0   :  { %9 = vsyncpa [#allocation3], 0  ;;  %s799_s0 = inlined_call_operand.vmem [shape: f32[16,8], index: 0, kind: input, shape index: {}]   ;;  %s800_s1 = inlined_call_operand.vmem [shape: f32[8,128], index: 1, kind: input, shape index: {}]   ;;  %s801_s2 = inlined_call_operand.hbm [shape: f32[128,128], index: 2, kind: input, shape index: {}]   ;;  %s802_s3 = inlined_call_operand.vmem [shape: f32[8,128], index: 3, kind: input, shape index: {}]   ;;  %s803_s4 = inlined_call_operand.hbm [shape: f32[16,32], index: 4, kind: output, shape index: {}]  }
   0x1   :  { %10 = vsyncpa [#allocation4], 0 }
   0x2   :  { %12 = vsyncpa [#allocation4 + $0x1], 0  ;;  %s686_s15 = smov 0   ;;  %s688_s16 = smov 0  }
   0x3   :  { %s690_s17 = smov 0   ;;  %s692_s18 = smov 0  }
   0x4 LB: > { %s707_s19 = sadd.s32 4294967295, %s656_s18   ;;  %s482_s20 = sadd.s32 4294967294, %s656_s18   ;;  %s656_s18 = sphi %s692_s18, %s809_s18   ;;  %s652_s17 = sphi %s690_s17, %s808_s17   ;;  %s648_s16 = sphi %s688_s16, %s807_s16   ;;  %s644_s15 = sphi %s686_s15, %s806_s15  }
   0x5   : > { %s711_s21 = sadd.s32 1, %s656_s18   ;;  %s114_s22 = sadd.s32 1, %s652_s17 }
   0x6   : > { %s111_s23 = ssub.s32 %s656_s18, %s711_s21  ;;  %p124_p0 = scmp.ne.s32.totalorder %s652_s17, %s648_s16 }
   0x7   : > { %p112_p1 = scmp.eq.s32.totalorder %s111_s23, 0  ;;  %p125_p2 = scmp.eq.s32.totalorder %s707_s19, 1 }
   0x8   : > { %p130_p3 = scmp.ne.s32.totalorder %s648_s16, %s644_s15  ;;  %p131_p4 = scmp.eq.s32.totalorder %s482_s20, 1 }
   0x9   : > { %s722_s24 = scalar_select %p112_p1, %s652_s17, %s114_s22  }
   0xa   : > { %p724_p5 = por %p125_p2, %p124_p0  ;;  %p728_p6 = por %p131_p4, %p130_p3 }
   0xb   : > { %p483_p7 = scmp.ge.s32.totalorder %s656_s18, 1  ;;  %p138_p8 = scmp.lt.s32.totalorder %s656_s18, 3 }
   0xc   : > { %p511_p9 = scmp.eq.s32.totalorder %s707_s19, 0  ;;  %s152_s29 = sshll.u32 %s801_s2, 4  ;;  %s153_s29 = int_to_ptr.hbm [resolvable:$true] %s152_s29 }
   0xd   : > { %p139_p10 = pnand %p483_p7, %p138_p8  ;;  %s658_s30 = smov [#allocation2]  }
   0xe   : > { %s154_s5 = sshll.u32 %s658_s30, 4  ;;  %s659_s6 = smov 128   ;;  %s155_s5 = int_to_ptr.vmem [resolvable:$true] %s154_s5 }
   0xf   : > { %p503_p11 = pneg %p139_p10  ;;  %s660_s7 = smov 8  }
  0x10   : > { %180 = sbr.rel (%p139_p10) target bundleno = 658 (0x292), region = 36 }
  0x11   : > { %p504_p12 = pnand %p511_p9, %p503_p11 }
  0x13   : > { %506 = dma.hbm_to_vmem [thread:$0]  (!%p504_p12), %s153_s29, 2048, %s155_s5, [#allocation3], %s659_s6, %s659_s6, %s660_s7  }
  0x15   : > { %635 = dma.done.wait (%p511_p9), [#allocation3], 2048  }
  0x16   : > { %637 = vsyncadd (%p511_p9), [#allocation3], 4294965248  ;;  %p206_p13 = scmp.lt.s32.totalorder %s707_s19, 1  ;;  %vm218_vm0 = vcmask 64512   ;;  %v216_v0 = vld [vmem:[%s800_s1] sm:$0xff]  ;;  %v327_v44 = vld [vmem:[#allocation2 + $0x78] sm:$0xff] }
  0x17   : > { %237 = vmatpush.msra.mxu0 %v216_v0  ;;  %v549_v2 = vld [vmem:[%s802_s3] ss:$0 sm:$0xff]  ;;  %v326_v45 = vld [vmem:[#allocation2 + $0x70] sm:$0xff]  ;;  %329 = vmatpush.msra.mxu1 %v327_v44  ;;  %v550_v48 = vld [vmem:[%s802_s3 + $0x4] ss:$0 sm:$0xff]  ;;  %s494_s10 = sshll.u32 %s707_s19, 3 }
  0x18   : > { %s207_s8 = scalar_select %p206_p13, %s707_s19, 1  ;;  %v325_v52 = vld [vmem:[#allocation2 + $0x68] sm:$0xff]  ;;  %v324_v53 = vld [vmem:[#allocation2 + $0x60] sm:$0xff]  ;;  %v323_v54 = vld [vmem:[#allocation2 + $0x58] sm:$0xff]  ;;  %vm393_vm12 = vcmask 261120  }
  0x19   : > { %330 = vmatpush.msra.mxu1 %v326_v45  ;;  %v322_v55 = vld [vmem:[#allocation2 + $0x50] sm:$0xff]  ;;  %v321_v56 = vld [vmem:[#allocation2 + $0x48] sm:$0xff]  ;;  %v320_v57 = vld [vmem:[#allocation2 + $0x40] sm:$0xff]  ;;  %s406_s13 = scalar_lea.hbm %s803_s4, %s494_s10  ;;  %s610_s30 = scalar_lea.hbm %s803_s4, 16 }
  0x1a   : > { %s489_s9 = sshll.u32 %s207_s8, 3  ;;  %v319_v58 = vld [vmem:[#allocation2 + $0x38] sm:$0xff]  ;;  %v318_v59 = vld [vmem:[#allocation2 + $0x30] sm:$0xff]  ;;  %v317_v60 = vld [vmem:[#allocation2 + $0x28] sm:$0xff]  ;;  %s203_s8 = sand.u32 1, %s648_s16  }
  0x1b   : > { %s209_s12 = scalar_lea.vmem %s799_s0, %s489_s9  ;;  %331 = vmatpush.msra.mxu1 %v325_v52  ;;  %v316_v61 = vld [vmem:[#allocation2 + $0x20] sm:$0xff]  ;;  %v315_v62 = vld [vmem:[#allocation2 + $0x18] sm:$0xff]  ;;  %v314_v63 = vld [vmem:[#allocation2 + $0x10] sm:$0xff]  ;;  %s488_s9 = sshll.u32 %s203_s8, 3 }
  0x1c   : > { %v210_v1 = vld [vmem:[%s209_s12] sm:$0xff]  ;;  %v313_v0 = vld [vmem:[#allocation2 + $0x8] sm:$0xff]  ;;  %s205_s14 = scalar_lea.vmem [#allocation5], %s488_s9  ;;  %s410_s22 = sshll.u32 %s406_s13, 4  ;;  %s411_s22 = int_to_ptr.hbm [resolvable:$true] %s410_s22 }
  0x1d   : > { %490 = vmatmul.msk.f32.vlgmr.msra.gmra.mxu0 %vm218_vm0, %v210_v1  ;;  %332 = vmatpush.msra.mxu1 %v324_v53  ;;  %v312_v1 = vld [vmem:[#allocation2] sm:$0xff]  ;;  %s408_s20 = sshll.u32 %s205_s14, 4  ;;  %s396_s19 = scalar_lea.sflag [#allocation4], %s203_s8  ;;  %s409_s20 = int_to_ptr.vmem [resolvable:$true] %s408_s20 }
  0x1e   : > { %s604_s23 = sshra.s32 %s411_s22, 4  ;;  %s605_s23 = int_to_ptr.hbm [resolvable:$true] %s604_s23 }
  0x1f   : > { %333 = vmatpush.msra.mxu1 %v323_v54  ;;  %s606_s27 = scalar_lea.hbm %s605_s23, 8  ;;  %p611_p3 = scmp.lt.s32.totalorder %s605_s23, %s803_s4 }
  0x20   : > { %p607_p0 = scmp.ne.s32.totalorder %s605_s23, %s606_s27  ;;  %p612_p4 = scmp.lt.s32.totalorder %s610_s30, %s606_s27 }
  0x21   : > { %334 = vmatpush.msra.mxu1 %v322_v55 }
  0x22   : > { %p608_p1 = pnand %p607_p0, %p724_p5  ;;  %p613_p7 = por %p612_p4, %p611_p3 }
  0x23   : > { %335 = vmatpush.msra.mxu1 %v321_v56 }
  0x24   : > { %p609_p2 = pneg %p608_p1 }
  0x25   : > { %336 = vmatpush.msra.mxu1 %v320_v57 }
  0x26   : > { %p614_p8 = pnand %p613_p7, %p609_p2 }
  0x27   : > { %337 = vmatpush.msra.mxu1 %v319_v58 }
  0x29   : > { %338 = vmatpush.msra.mxu1 %v318_v59 }
  0x2b   : > { %339 = vmatpush.msra.mxu1 %v317_v60 }
  0x2d   : > { %340 = vmatpush.msra.mxu1 %v316_v61 }
  0x2f   : > { %341 = vmatpush.msra.mxu1 %v315_v62 }
  0x31   : > { %342 = vmatpush.msra.mxu1 %v314_v63 }
  0x33   : > { %343 = vmatpush.msra.mxu1 %v313_v0 }
  0x35   : > { %344 = vmatpush.msra.mxu1 %v312_v1 }
  0x9a   : > { %v239_v3 = vpop.f32.mrf.mxu0 }
  0x9b   : > { %v240_v4 = vadd.f32 %v549_v2, %v239_v3 }
  0x9d   : > { %v243_v5 = vmul.f32 0.70710677, %v240_v4  ;;  %v242_v41 = vmul.f32 0.5, %v240_v4 }
  0x9f   : > { %v244_v6 = vmul.f32 %v243_v5, %v243_v5 }
  0xa1   : > { %v245_v7 = vmin.f32 %v244_v6, 16.0 }
  0xa3   : > { %v246_v8 = vmul.f32 2.1237322e-06, %v245_v7  ;;  %v257_v9 = vmul.f32 3.8918573e-05, %v245_v7 }
  0xa5   : > { %v247_v10 = vadd.f32 0.00028619796, %v246_v8  ;;  %v258_v11 = vadd.f32 0.001143296, %v257_v9 }
  0xa7   : > { %v248_v12 = vmul.f32 %v247_v10, %v245_v7  ;;  %v259_v13 = vmul.f32 %v258_v11, %v245_v7  ;;  %v551_v11 = vld [vmem:[%s802_s3 + $0x1] ss:$0 sm:$0xff] }
  0xa9   : > { %v260_v14 = vadd.f32 0.014752088, %v259_v13  ;;  %v249_v15 = vadd.f32 0.0036580483, %v248_v12 }
  0xab   : > { %v261_v16 = vmul.f32 %v260_v14, %v245_v7  ;;  %v250_v18 = vmul.f32 %v249_v15, %v245_v7  ;;  %v552_v14 = vld [vmem:[%s802_s3 + $0x2] ss:$0 sm:$0xff] }
  0xad   : > { %v262_v17 = vadd.f32 0.112945676, %v261_v16  ;;  %v251_v21 = vadd.f32 0.05243302, %v250_v18 }
  0xaf   : > { %v263_v19 = vmul.f32 %v262_v17, %v245_v7  ;;  %v252_v24 = vmul.f32 %v251_v21, %v245_v7  ;;  %v553_v17 = vld [vmem:[%s802_s3 + $0x3] ss:$0 sm:$0xff] }
  0xb1   : > { %v264_v20 = vadd.f32 0.4994258, %v263_v19  ;;  %v253_v25 = vadd.f32 0.18741608, %v252_v24 }
  0xb3   : > { %v265_v22 = vmul.f32 %v264_v20, %v245_v7  ;;  %v254_v27 = vmul.f32 %v253_v25, %v245_v7 }
  0xb5   : > { %v266_v23 = vadd.f32 1.0, %v265_v22  ;;  %v255_v31 = vadd.f32 1.1283791, %v254_v27 }
  0xb7   : > { %554 = vrcp.f32 %v266_v23  ;;  %v278_v30 = vand.u32 2147483648, %v266_v23  ;;  %v276_v33 = vand.u32 2147483647, %v266_v23  ;;  %vm272_vm2 = vweird.f32 %v266_v23 }
  0xb8   : > { %v256_v36 = vmul.f32 %v255_v31, %v243_v5 }
  0xb9   : > { %v279_v35 = vor.u32 1.1754944e-38, %v278_v30  ;;  %vm277_vm4 = vcmp.eq.f32.partialorder %v276_v33, 8.507059e+37 }
  0xbd   : > { %v555_v26 = vpop.eup %554 }
  0xbe   : > { %v268_v28 = vmul.f32 %v555_v26, %v266_v23  ;;  %vm273_vm1 = vweird.f32 %v555_v26 }
  0xbf   : > { %vm274_vm3 = vmor %vm272_vm2, %vm273_vm1 }
  0xc0   : > { %v269_v29 = vsub.f32 1.0, %v268_v28 }
  0xc2   : > { %v270_v32 = vmul.f32 %v555_v26, %v269_v29 }
  0xc4   : > { %v271_v34 = vadd.f32 %v555_v26, %v270_v32 }
  0xc6   : > { %v275_v37 = vsel %vm274_vm3, %v555_v26, %v271_v34 }
  0xc7   : > { %v280_v38 = vsel %vm277_vm4, %v279_v35, %v275_v37 }
  0xc8   : > { %v281_v39 = vmul.f32 %v280_v38, %v256_v36 }
  0xca   : > { %v491_v40 = vclamps-f32 %v281_v39, 1.0 }
  0xcc   : > { %v284_v42 = vadd.f32 1.0, %v491_v40 }
  0xce   : > { %v285_v43 = vmul.f32 %v284_v42, %v242_v41 }
  0xd0   : > { %286 = vadd.xlane.f32.xlu0 %v285_v43 }
 0x143   : > { %v287_v46 = vpop.xlane.xlu0 %286 }
 0x144   : > { %v288_v47 = vmul.f32 0.03125, %v287_v46 }
 0x146   : > { %v289_v49 = vsub.f32 %v285_v43, %v288_v47 }
 0x148   : > { %v291_v50 = vmul.f32 %v550_v48, %v289_v49 }
 0x14a   : > { %v292_v51 = vmul.f32 %v291_v50, %v291_v50 }
 0x14c   : > { %293 = vadd.xlane.f32.xlu0 %v292_v51 }
 0x1bf   : > { %v294_v2 = vpop.xlane.xlu0 %293 }
 0x1c0   : > { %v295_v3 = vmul.f32 0.03125, %v294_v2 }
 0x1c2   : > { %v296_v4 = vadd.f32 1e-05, %v295_v3 }
 0x1c4   : > { %556 = vrsqrt.f32 %v296_v4  ;;  %vm303_vm6 = vweird.f32 %v296_v4 }
 0x1ca   : > { %v557_v5 = vpop.eup %556 }
 0x1cb   : > { %v298_v6 = vmul.f32 %v557_v5, %v296_v4  ;;  %vm304_vm5 = vweird.f32 %v557_v5 }
 0x1cc   : > { %vm305_vm7 = vmor %vm303_vm6, %vm304_vm5 }
 0x1cd   : > { %v299_v7 = vmul.f32 %v557_v5, %v298_v6 }
 0x1cf   : > { %v300_v8 = vmul.f32 0.5, %v299_v7 }
 0x1d1   : > { %v301_v9 = vsub.f32 1.5, %v300_v8 }
 0x1d3   : > { %v302_v10 = vmul.f32 %v557_v5, %v301_v9 }
 0x1d5   : > { %v306_v12 = vsel %vm305_vm7, %v557_v5, %v302_v10 }
 0x1d6   : > { %v307_v13 = vmul.f32 %v306_v12, %v289_v49 }
 0x1d8   : > { %v309_v15 = vmul.f32 %v551_v11, %v307_v13 }
 0x1da   : > { %v311_v16 = vadd.f32 %v552_v14, %v309_v15 }
 0x1dc   : > { %345 = vmatmul.f32.vlgmr.msra.gmra.mxu1 %v311_v16 }
 0x259   : > { %v346_v18 = vpop.f32.mrf.mxu1 }
 0x25a   : > { %v347_v19 = vadd.f32 %v553_v17, %v346_v18 }
 0x25c   : > { %v350_v20 = vmul.f32 0.70710677, %v347_v19  ;;  %v349_v56 = vmul.f32 0.5, %v347_v19 }
 0x25e   : > { %v351_v21 = vmul.f32 %v350_v20, %v350_v20 }
 0x260   : > { %v352_v22 = vmin.f32 %v351_v21, 16.0 }
 0x262   : > { %v353_v23 = vmul.f32 2.1237322e-06, %v352_v22  ;;  %v364_v24 = vmul.f32 3.8918573e-05, %v352_v22 }
 0x264   : > { %v354_v25 = vadd.f32 0.00028619796, %v353_v23  ;;  %v365_v26 = vadd.f32 0.001143296, %v364_v24 }
 0x266   : > { %v355_v27 = vmul.f32 %v354_v25, %v352_v22  ;;  %v366_v28 = vmul.f32 %v365_v26, %v352_v22 }
 0x268   : > { %v367_v29 = vadd.f32 0.014752088, %v366_v28  ;;  %v356_v30 = vadd.f32 0.0036580483, %v355_v27 }
 0x26a   : > { %v368_v31 = vmul.f32 %v367_v29, %v352_v22  ;;  %v357_v33 = vmul.f32 %v356_v30, %v352_v22 }
 0x26c   : > { %v369_v32 = vadd.f32 0.112945676, %v368_v31  ;;  %v358_v36 = vadd.f32 0.05243302, %v357_v33 }
 0x26e   : > { %v370_v34 = vmul.f32 %v369_v32, %v352_v22  ;;  %v359_v39 = vmul.f32 %v358_v36, %v352_v22 }
 0x270   : > { %v371_v35 = vadd.f32 0.4994258, %v370_v34  ;;  %v360_v40 = vadd.f32 0.18741608, %v359_v39 }
 0x272   : > { %v372_v37 = vmul.f32 %v371_v35, %v352_v22  ;;  %v361_v42 = vmul.f32 %v360_v40, %v352_v22 }
 0x274   : > { %v373_v38 = vadd.f32 1.0, %v372_v37  ;;  %v362_v46 = vadd.f32 1.1283791, %v361_v42 }
 0x276   : > { %558 = vrcp.f32 %v373_v38  ;;  %v385_v45 = vand.u32 2147483648, %v373_v38  ;;  %v383_v48 = vand.u32 2147483647, %v373_v38  ;;  %vm379_vm9 = vweird.f32 %v373_v38 }
 0x277   : > { %v363_v51 = vmul.f32 %v362_v46, %v350_v20 }
 0x278   : > { %v386_v50 = vor.u32 1.1754944e-38, %v385_v45  ;;  %vm384_vm11 = vcmp.eq.f32.partialorder %v383_v48, 8.507059e+37 }
 0x27c   : > { %v559_v41 = vpop.eup %558 }
 0x27d   : > { %v375_v43 = vmul.f32 %v559_v41, %v373_v38  ;;  %vm380_vm8 = vweird.f32 %v559_v41 }
 0x27e   : > { %vm381_vm10 = vmor %vm379_vm9, %vm380_vm8 }
 0x27f   : > { %v376_v44 = vsub.f32 1.0, %v375_v43 }
 0x281   : > { %v377_v47 = vmul.f32 %v559_v41, %v376_v44 }
 0x283   : > { %v378_v49 = vadd.f32 %v559_v41, %v377_v47 }
 0x285   : > { %v382_v52 = vsel %vm381_vm10, %v559_v41, %v378_v49 }
 0x286   : > { %v387_v53 = vsel %vm384_vm11, %v386_v50, %v382_v52 }
 0x287   : > { %v388_v54 = vmul.f32 %v387_v53, %v363_v51 }
 0x289   : > { %v492_v55 = vclamps-f32 %v388_v54, 1.0 }
 0x28b   : > { %v391_v57 = vadd.f32 1.0, %v492_v55 }
 0x28d   : > { %v392_v58 = vmul.f32 %v391_v57, %v349_v56 }
 0x28f   : > { %394 = vst.msk [vmem:[%s205_s14] sm:$0xff] %vm393_vm12, %v392_v58 }
 0x290   : > { %617 = shalt.err (!%p614_p8)
}
 0x291   : > { %501 = dma.vmem_to_hbm [thread:$0]  (%p724_p5), %s409_s20, 128, %s411_s22, %s396_s19  }
 0x292 PF: > { %p513_p9 = scmp.ge.s32.totalorder %s656_s18, 2  ;;  %s422_s7 = sand.u32 1, %s644_s15  }
 0x293   : > { %s423_s8 = scalar_lea.sflag [#allocation4], %s422_s7 }
 0x294   : > { %p508_p10 = pnand %p513_p9, %p728_p6 }
 0x296   : > { %p509_p11 = pneg %p508_p10 }
 0x298   : > { %639 = dma.done.wait (%p509_p11), %s423_s8, 128  }
 0x299   : > { %641 = vsyncadd (%p509_p11), %s423_s8, 4294967168  ;;  %p15_p12 = scmp.ge.s32.totalorder %s711_s21, 4   ;;  %s806_s15 = smov %s648_s16 }
 0x29a   : > { %s807_s16 = smov %s652_s17  ;;  %s808_s17 = smov %s722_s24 }
 0x29b   : > { %s809_s18 = smov %s711_s21  ;;  %17 = sbr.rel (!%p15_p12) target bundleno = 4 (0x4), region = 76 }
 0x2a0   :  { %429 = vsyncpa [#allocation3], 1 }
 0x2a1   :  { %431 = vsyncpa [#allocation3 + $0x1], 1 }
 0x2a2   :  { %432 = vsyncpa [#allocation4], 1 }
 0x2a3   :  { %434 = vsyncpa [#allocation4 + $0x1], 1 }

</bundles_post_ra>
